<compile_context>
chip_gen: v6e
topology: v6e:2x2x1
jax: 0.10.0
libtpu: 0.0.40
codegen_flags: <defaults>
</compile_context>

<pallas_src>
import jax
import jax.numpy as jnp
from jax.experimental import pallas as pl
from jax.experimental.pallas import tpu as pltpu


# ----------------------------------------------------------------------------
# Pallas kernel
# ----------------------------------------------------------------------------
def _sparsity_kernel(w_ref, v_ref, c_ref, eps_ref, out_ref):
    """Fused streaming matvec + concrete-relaxation epilogue for one row tile.

      s    = sum_h W[n, h] * v[h] + c            (pre-sigmoid logits, f32)
      keep = sigmoid(log eps - log(1-eps) + s)   (logit(sigmoid(s)) == s)
    """
    w = w_ref[...].astype(jnp.float32)          # (tn, H) — the only big stream
    v = v_ref[...]                              # (1, H) f32, broadcasts over rows
    s = jnp.sum(w * v, axis=-1, keepdims=True) + c_ref[0, 0]   # (tn, 1) f32
    eps = eps_ref[...]                          # (tn, 1) f32
    out_ref[...] = jax.nn.sigmoid(jnp.log(eps) - jnp.log(1.0 - eps) + s)


# ----------------------------------------------------------------------------
# Tiling / VMEM heuristics
# ----------------------------------------------------------------------------
def _vmem_budget_bytes():
    """(double-buffer budget, vmem_limit) for the local TPU generation.

    128-MiB VMEM parts (v5e/v6e) get 40 MiB of tile double-buffer and a 64 MiB
    scoped limit; 64-MiB parts (v7x) are capped at 20 MiB / 40 MiB so tiles
    tuned on v6e cannot OOM or thrash v7x.  Falls back to the conservative
    (v7x-safe) numbers if the query is unavailable.
    """
    try:
        phys = int(getattr(pltpu.get_tpu_info(), "vmem_capacity_bytes", 0) or 0)
    except Exception:  # query unavailable (e.g. odd backends) -> be conservative
        phys = 0
    if phys >= 100 * 1024 * 1024:
        return 40 * 1024 * 1024, 64 * 1024 * 1024
    return 20 * 1024 * 1024, 40 * 1024 * 1024


def _pick_row_tile(n, h, itemsize, budget_bytes):
    """Row tile for streaming W, sized by bytes (not a fixed row cap).

    Charges the double-buffered W tile plus the lane-padded (tn,1) eps/out
    blocks (padded to 128 lanes in VMEM) against `budget_bytes`.  Targets the
    largest tile that fits; keeps a ~2 MiB-per-step floor so the ~0.35 us
    per-grid-step overhead stays small; splits a fully-resident W into >=3-4
    tiles so both v7x TensorCores get multiple pipelined grid steps.
    """
    per_row = 2 * h * itemsize + 4 * 128 * 4        # W x2 bufs + eps/out padded x2 bufs
    cap = max(128, (budget_bytes // per_row) // 128 * 128)
    min_rows = max(128, min(cap, (2 * 1024 * 1024 // per_row) // 128 * 128))

    if n <= cap:
        if n <= 256 or n % 128 != 0:
            return n                                # small / un-tileable: one full block
        for parts in (4, 3, 2):                     # megacore: >=2 steps per TC when big
            tn = n // parts
            if n % parts == 0 and tn % 128 == 0 and tn >= min_rows:
                return tn
        return n

    # W larger than the budget: largest multiple-of-128 divisor of n within cap.
    tn = cap
    while tn >= min_rows and n % tn != 0:
        tn -= 128
    return tn if tn >= min_rows else cap            # non-dividing fallback (edge masked)


# ----------------------------------------------------------------------------
# Wrapper around pallas_call
# ----------------------------------------------------------------------------
def _sparsity_forward(weight_matrix, proj_w, proj_b, row_sparsities, eps):
    """weight_matrix: (N, H); proj_w: (I, H); proj_b: (I,);
    row_sparsities: (I, 1); eps: (N, 1) uniform noise. Returns keep_probs (N,)."""
    N, H = weight_matrix.shape
    f32 = jnp.float32

    # Collapse the two matmuls: (W @ P^T + b) @ r == W @ (P^T r) + (b . r).
    # jnp.dot(r, P) contracts P's row axis, so no (H, I) transpose is ever
    # materialized in HBM.  v stays in f32 (better numerics; VPU math is f32).
    r = row_sparsities.astype(f32)[:, 0]                 # (I,)
    v = jnp.dot(r, proj_w.astype(f32)).reshape(1, H)     # (1, H) lane-dense row
    c = jnp.dot(proj_b.astype(f32), r).reshape(1, 1)     # scalar bias term -> SMEM

    w = weight_matrix                  # native dtype: bf16 stays bf16 (half the bytes)
    eps = eps.astype(f32)

    itemsize = jnp.dtype(w.dtype).itemsize
    budget, vmem_limit = _vmem_budget_bytes()
    tn = _pick_row_tile(N, H, itemsize, budget)
    grid = (pl.cdiv(N, tn),)

    out = pl.pallas_call(
        _sparsity_kernel,
        out_shape=jax.ShapeDtypeStruct((N, 1), f32),
        grid=grid,
        in_specs=[
            pl.BlockSpec((tn, H), lambda i: (i, 0)),               # W row tile
            pl.BlockSpec((1, H), lambda i: (0, 0)),                # v row (resident, tiny)
            pl.BlockSpec(memory_space=pltpu.MemorySpace.SMEM),     # c scalar in SMEM
            pl.BlockSpec((tn, 1), lambda i: (i, 0)),               # uniform noise rows
        ],
        out_specs=pl.BlockSpec((tn, 1), lambda i: (i, 0)),
        compiler_params=pltpu.CompilerParams(
            dimension_semantics=("parallel",),       # v7x: 2 TCs shard the row grid
            vmem_limit_bytes=vmem_limit),
        cost_estimate=pl.CostEstimate(
            flops=2 * N * H,
            transcendentals=3 * N,
            bytes_accessed=N * H * itemsize + 2 * N * 4 + H * 4),
    )(w, v, c, eps)
    return out[:, 0]


# ----------------------------------------------------------------------------
# Module-level wrapper (parameter container + branch selection, like forward())
# ----------------------------------------------------------------------------
def init_sparsity_predictor_params(key, hidden_size, intermediate_size):
    ks = jax.random.split(key, 6)
    lim = 1.0 / jnp.sqrt(hidden_size)   # both Linears have in_features=hidden
    return {
        "hidden_size": hidden_size,
        "intermediate_size": intermediate_size,
        "proj_intermediate_w": jax.random.uniform(
            ks[0], (intermediate_size, hidden_size), jnp.float32, -lim, lim),
        "proj_intermediate_b": jax.random.uniform(
            ks[1], (intermediate_size,), jnp.float32, -lim, lim),
        "proj_query_w": jax.random.uniform(
            ks[2], (hidden_size, hidden_size), jnp.float32, -lim, lim),
        "proj_query_b": jax.random.uniform(
            ks[3], (hidden_size,), jnp.float32, -lim, lim),
        "row_sparsities": jax.random.uniform(
            ks[4], (intermediate_size, 1), jnp.float32),
        "row_sparsities_query": jax.random.uniform(
            ks[5], (hidden_size, 1), jnp.float32),
        # row_sparsities_bias / row_sparsities_bias_query exist in __init__ but
        # are unused in forward(); omitted from the compute path.
    }


def sparsity_predictor_forward(params, weight_matrix, noise_key):
    # Branch selection by row count mirrors the PyTorch forward (note: this is
    # ambiguous when hidden_size == intermediate_size; inherited module issue).
    N = weight_matrix.shape[0]
    eps = jax.random.uniform(noise_key, (N, 1), dtype=jnp.float32)
    if N == params["intermediate_size"]:
        pw, pb, r = (params["proj_intermediate_w"],
                     params["proj_intermediate_b"],
                     params["row_sparsities"])
    else:
        pw, pb, r = (params["proj_query_w"],
                     params["proj_query_b"],
                     params["row_sparsities_query"])
    return _sparsity_forward(weight_matrix, pw, pb, r, eps)


def _reference_forward(params, weight_matrix, noise_key):
    """Pure-JAX mirror of the PyTorch forward (same math, same noise)."""
    N = weight_matrix.shape[0]
    eps = jax.random.uniform(noise_key, (N, 1), dtype=jnp.float32)[:, 0]
    if N == params["intermediate_size"]:
        proj = weight_matrix @ params["proj_intermediate_w"].T + params["proj_intermediate_b"]
        alpha = jax.nn.sigmoid(proj @ params["row_sparsities"])[:, 0]
    else:
        proj = weight_matrix @ params["proj_query_w"].T + params["proj_query_b"]
        alpha = jax.nn.sigmoid(proj @ params["row_sparsities_query"])[:, 0]
    return jax.nn.sigmoid(jnp.log(eps) - jnp.log(1.0 - eps)
                          + jnp.log(alpha) - jnp.log(1.0 - alpha))


if __name__ == "__main__":
    key = jax.random.PRNGKey(0)
    pkey, wk1, wk2, nk1, nk2 = jax.random.split(key, 5)

    hidden_size = 64
    intermediate_size = 256
    params = init_sparsity_predictor_params(pkey, hidden_size, intermediate_size)

    # Branch 1: rows == intermediate_size -> proj_intermediate / row_sparsities.
    wm_inter = 0.1 * jax.random.normal(wk1, (intermediate_size, hidden_size),
                                       dtype=jnp.float32)
    keep_inter = jax.block_until_ready(
        sparsity_predictor_forward(params, wm_inter, nk1))
    ref_inter = _reference_forward(params, wm_inter, nk1)
    assert keep_inter.shape == (intermediate_size,)
    assert jnp.allclose(keep_inter, ref_inter, atol=1e-5, rtol=1e-5)

    # Branch 2: any other row count -> proj_query / row_sparsities_query.
    wm_query = 0.1 * jax.random.normal(wk2, (32, hidden_size), dtype=jnp.float32)
    keep_query = jax.block_until_ready(
        sparsity_predictor_forward(params, wm_query, nk2))
    ref_query = _reference_forward(params, wm_query, nk2)
    assert keep_query.shape == (32,)
    assert jnp.allclose(keep_query, ref_query, atol=1e-5, rtol=1e-5)

    # bf16 weight matrix: the wrapper does NOT upcast, so the W stream is half
    # the bytes; the kernel still computes in f32 (v stays f32 too).
    wm_bf16 = wm_inter.astype(jnp.bfloat16)
    keep_bf16 = jax.block_until_ready(
        sparsity_predictor_forward(params, wm_bf16, nk1))
    ref_bf16 = _reference_forward(params, wm_bf16.astype(jnp.float32), nk1)
    assert keep_bf16.shape == (intermediate_size,)
    assert jnp.allclose(keep_bf16, ref_bf16, atol=2e-2, rtol=2e-2)

    print("KERNEL_OK")
</pallas_src>

<mosaic_0001>
module attributes {stable_mosaic.version = 11 : i64} {
  func.func @_sparsity_kernel(%arg0: i32, %arg1: memref<256x64xf32, #tpu.memory_space<vmem>>, %arg2: memref<1x64xf32, #tpu.memory_space<vmem>>, %arg3: memref<1x1xf32, #tpu.memory_space<smem>>, %arg4: memref<256x1xf32, #tpu.memory_space<vmem>>, %arg5: memref<256x1xf32, #tpu.memory_space<vmem>>) attributes {dimension_semantics = [#tpu.dimension_semantics<parallel>], iteration_bounds = array<i64: 1>, scalar_prefetch = 0 : i64, scratch_operands = 0 : i64, tpu.core_type = #tpu.core_type<tc>, window_params = [{transform_indices = @transform_0, window_bounds = array<i64: 256, 64>}, {pipeline_mode = #tpu.pipeline_mode<synchronous>, transform_indices = @transform_1, window_bounds = array<i64: 1, 64>}, {transform_indices = @transform_2, window_bounds = array<i64: 1, 1>}, {transform_indices = @transform_3, window_bounds = array<i64: 256, 1>}, {transform_indices = @transform_4, window_bounds = array<i64: 256, 1>}]} {
    %c0 = arith.constant 0 : index
    %c0_0 = arith.constant 0 : index
    %0 = vector.load %arg1[%c0, %c0_0] : memref<256x64xf32, #tpu.memory_space<vmem>>, vector<256x64xf32>
    %c0_1 = arith.constant 0 : index
    %c0_2 = arith.constant 0 : index
    %1 = vector.load %arg2[%c0_1, %c0_2] : memref<1x64xf32, #tpu.memory_space<vmem>>, vector<1x64xf32>
    %2 = vector.broadcast %1 : vector<1x64xf32> to vector<256x64xf32>
    %3 = arith.mulf %0, %2 : vector<256x64xf32>
    %cst = arith.constant dense<0.000000e+00> : vector<256xf32>
    %4 = vector.multi_reduction <add>, %3, %cst [1] : vector<256x64xf32> to vector<256xf32>
    %5 = vector.shape_cast %4 : vector<256xf32> to vector<256x1xf32>
    %c0_3 = arith.constant 0 : index
    %c0_4 = arith.constant 0 : index
    %6 = memref.load %arg3[%c0_3, %c0_4] : memref<1x1xf32, #tpu.memory_space<smem>>
    %7 = vector.broadcast %6 : f32 to vector<256x1xf32>
    %8 = arith.addf %5, %7 : vector<256x1xf32>
    %c0_5 = arith.constant 0 : index
    %c0_6 = arith.constant 0 : index
    %9 = vector.load %arg4[%c0_5, %c0_6] : memref<256x1xf32, #tpu.memory_space<vmem>>, vector<256x1xf32>
    %10 = math.log %9 : vector<256x1xf32>
    %cst_7 = arith.constant 1.000000e+00 : f32
    %11 = vector.broadcast %cst_7 : f32 to vector<256x1xf32>
    %12 = arith.subf %11, %9 : vector<256x1xf32>
    %13 = math.log %12 : vector<256x1xf32>
    %14 = arith.subf %10, %13 : vector<256x1xf32>
    %15 = arith.addf %14, %8 : vector<256x1xf32>
    %16 = arith.negf %15 : vector<256x1xf32>
    %17 = math.exp %16 : vector<256x1xf32>
    %cst_8 = arith.constant 1.000000e+00 : f32
    %18 = vector.broadcast %cst_8 : f32 to vector<256x1xf32>
    %19 = arith.addf %18, %17 : vector<256x1xf32>
    %20 = arith.divf %18, %19 : vector<256x1xf32>
    %c0_9 = arith.constant 0 : index
    %c0_10 = arith.constant 0 : index
    %21 = vector.load %arg5[%c0_9, %c0_10] : memref<256x1xf32, #tpu.memory_space<vmem>>, vector<256x1xf32>
    tpu.vector_store %arg5[%c0_9, %c0_10], %20 {strides = array<i32>} : memref<256x1xf32, #tpu.memory_space<vmem>>, vector<256x1xf32>,
    return
  }
  func.func @transform_0(%arg0: i32) -> (i32, i32) {
    %c0_i32 = arith.constant 0 : i32
    %c0_i32_0 = arith.constant 0 : i32
    return %arg0, %c0_i32 : i32, i32
  }
  func.func @transform_1(%arg0: i32) -> (i32, i32) {
    %c0_i32 = arith.constant 0 : i32
    %c0_i32_0 = arith.constant 0 : i32
    %c0_i32_1 = arith.constant 0 : i32
    return %c0_i32, %c0_i32_0 : i32, i32
  }
  func.func @transform_2(%arg0: i32) -> (i32, i32) {
    %c0_i32 = arith.constant 0 : i32
    %c0_i32_0 = arith.constant 0 : i32
    %c0_i32_1 = arith.constant 0 : i32
    return %c0_i32, %c0_i32_0 : i32, i32
  }
  func.func @transform_3(%arg0: i32) -> (i32, i32) {
    %c0_i32 = arith.constant 0 : i32
    %c0_i32_0 = arith.constant 0 : i32
    return %arg0, %c0_i32 : i32, i32
  }
  func.func @transform_4(%arg0: i32) -> (i32, i32) {
    %c0_i32 = arith.constant 0 : i32
    %c0_i32_0 = arith.constant 0 : i32
    return %arg0, %c0_i32 : i32, i32
  }
}

</mosaic_0001>

<bundles_post_ra>
// kernel: tpu_custom_call.1
= control target key start
LH: loop header
LB: loop body
LE: loop exit
PB: predicated region body
PF: predicated region fallthrough
CT: control target
= control target key end

     0   :  { %vm89_vm0 = vcmask 523264   ;;  %vm668_vm1 = vcmask 7168   ;;  %s1878_s0 = inlined_call_operand.vmem [shape: f32[256,64], index: 0, kind: input, shape index: {}]   ;;  %s1879_s1 = inlined_call_operand.vmem [shape: f32[1,64], index: 1, kind: input, shape index: {}]   ;;  %s1880_s3 = inlined_call_operand.vmem [shape: f32[256,1], index: 3, kind: input, shape index: {}]   ;;  %s1881_s2 = inlined_call_operand.<no memory space> [shape: f32[1,1], index: 2, kind: input, shape index: {}]   ;;  %s1882_s4 = inlined_call_operand.vmem [shape: f32[256,1], index: 4, kind: output, shape index: {}]  }
   0x1   :  { %v20_v0 = vld [vmem:[%s1878_s0 + $0x10] sm:$0xff]  ;;  %v1025_v1 = vld [vmem:[%s1879_s1] ss:$0 sm:$0xff]  ;;  %v21_v5 = vld [vmem:[%s1878_s0 + $0x18] sm:$0xff] }
   0x2   :  { %v18_v2 = vld [vmem:[%s1878_s0] sm:$0xff]  ;;  %v59_v3 = vmul.f32 %v1025_v1, %v20_v0  ;;  %v19_v6 = vld [vmem:[%s1878_s0 + $0x8] sm:$0xff]  ;;  %v60_v7 = vmul.f32 %v1025_v1, %v21_v5  ;;  %v25_v17 = vld [vmem:[%s1878_s0 + $0x38] sm:$0xff] }
   0x3   :  { %v57_v4 = vmul.f32 %v1025_v1, %v18_v2  ;;  %v58_v8 = vmul.f32 %v1025_v1, %v19_v6  ;;  %v23_v9 = vld [vmem:[%s1878_s0 + $0x28] sm:$0xff]  ;;  %v22_v10 = vld [vmem:[%s1878_s0 + $0x20] sm:$0xff]  ;;  %v24_v18 = vld [vmem:[%s1878_s0 + $0x30] sm:$0xff]  ;;  %v64_v21 = vmul.f32 %v1025_v1, %v25_v17 }
   0x4   :  { %v96_v11 = vsel %vm89_vm0, %v59_v3, 0.0  ;;  %v99_v13 = vsel %vm89_vm0, %v60_v7, 0.0  ;;  %v62_v15 = vmul.f32 %v1025_v1, %v23_v9  ;;  %v61_v16 = vmul.f32 %v1025_v1, %v22_v10  ;;  %v27_v23 = vld [vmem:[%s1878_s0 + $0x48] sm:$0xff]  ;;  %v26_v24 = vld [vmem:[%s1878_s0 + $0x40] sm:$0xff]  ;;  %v29_v29 = vld [vmem:[%s1878_s0 + $0x58] sm:$0xff] }
   0x5   :  { %v90_v12 = vsel %vm89_vm0, %v57_v4, 0.0  ;;  %97 = vadd.xlane.f32.xlu1 %v96_v11  ;;  %v93_v14 = vsel %vm89_vm0, %v58_v8, 0.0  ;;  %v63_v22 = vmul.f32 %v1025_v1, %v24_v18  ;;  %v111_v25 = vsel %vm89_vm0, %v64_v21, 0.0  ;;  %v28_v30 = vld [vmem:[%s1878_s0 + $0x50] sm:$0xff]  ;;  %v31_v35 = vld [vmem:[%s1878_s0 + $0x68] sm:$0xff]  ;;  %v30_v36 = vld [vmem:[%s1878_s0 + $0x60] sm:$0xff] }
   0x6   :  { %91 = vadd.xlane.f32.xlu0 %v90_v12  ;;  %v105_v19 = vsel %vm89_vm0, %v62_v15, 0.0  ;;  %v102_v20 = vsel %vm89_vm0, %v61_v16, 0.0  ;;  %v66_v27 = vmul.f32 %v1025_v1, %v27_v23  ;;  %v65_v28 = vmul.f32 %v1025_v1, %v26_v24  ;;  %v33_v41 = vld [vmem:[%s1878_s0 + $0x78] sm:$0xff]  ;;  %v32_v42 = vld [vmem:[%s1878_s0 + $0x70] sm:$0xff]  ;;  %v35_v47 = vld [vmem:[%s1878_s0 + $0x88] sm:$0xff] }
   0x7   :  { %v108_v26 = vsel %vm89_vm0, %v63_v22, 0.0  ;;  %v68_v33 = vmul.f32 %v1025_v1, %v29_v29  ;;  %v67_v34 = vmul.f32 %v1025_v1, %v28_v30  ;;  %v70_v39 = vmul.f32 %v1025_v1, %v31_v35  ;;  %v34_v48 = vld [vmem:[%s1878_s0 + $0x80] sm:$0xff]  ;;  %v37_v53 = vld [vmem:[%s1878_s0 + $0x98] sm:$0xff]  ;;  %v36_v54 = vld [vmem:[%s1878_s0 + $0x90] sm:$0xff] }
   0x8   :  { %v117_v31 = vsel %vm89_vm0, %v66_v27, 0.0  ;;  %v114_v32 = vsel %vm89_vm0, %v65_v28, 0.0  ;;  %v69_v40 = vmul.f32 %v1025_v1, %v30_v36  ;;  %v72_v45 = vmul.f32 %v1025_v1, %v33_v41  ;;  %v39_v59 = vld [vmem:[%s1878_s0 + $0xa8] sm:$0xff]  ;;  %v38_v60 = vld [vmem:[%s1878_s0 + $0xa0] sm:$0xff]  ;;  %v41_v2 = vld [vmem:[%s1878_s0 + $0xb8] sm:$0xff] }
   0x9   :  { %100 = vadd.xlane.f32.xlu1 %v99_v13  ;;  %v123_v37 = vsel %vm89_vm0, %v68_v33, 0.0  ;;  %v120_v38 = vsel %vm89_vm0, %v67_v34, 0.0  ;;  %v129_v43 = vsel %vm89_vm0, %v70_v39, 0.0  ;;  %v71_v46 = vmul.f32 %v1025_v1, %v32_v42  ;;  %v40_v3 = vld [vmem:[%s1878_s0 + $0xb0] sm:$0xff]  ;;  %v43_v8 = vld [vmem:[%s1878_s0 + $0xc8] sm:$0xff]  ;;  %v42_v9 = vld [vmem:[%s1878_s0 + $0xc0] sm:$0xff] }
   0xa   :  { %94 = vadd.xlane.f32.xlu0 %v93_v14  ;;  %v126_v44 = vsel %vm89_vm0, %v69_v40, 0.0  ;;  %v135_v49 = vsel %vm89_vm0, %v72_v45, 0.0  ;;  %v74_v51 = vmul.f32 %v1025_v1, %v35_v47  ;;  %v73_v52 = vmul.f32 %v1025_v1, %v34_v48  ;;  %v45_v14 = vld [vmem:[%s1878_s0 + $0xd8] sm:$0xff]  ;;  %v44_v15 = vld [vmem:[%s1878_s0 + $0xd0] sm:$0xff]  ;;  %v46_v21 = vld [vmem:[%s1878_s0 + $0xe0] sm:$0xff] }
   0xb   :  { %v132_v50 = vsel %vm89_vm0, %v71_v46, 0.0  ;;  %v76_v57 = vmul.f32 %v1025_v1, %v37_v53  ;;  %v75_v58 = vmul.f32 %v1025_v1, %v36_v54  ;;  %v78_v63 = vmul.f32 %v1025_v1, %v39_v59  ;;  %v48_v27 = vld [vmem:[%s1878_s0 + $0xf0] sm:$0xff]  ;;  %v220_v35 = vld [vmem:[%s1880_s3] sm:$0xff]  ;;  %v225_v40 = vld [vmem:[%s1880_s3 + $0x28] sm:$0xff] }
   0xc   :  { %v141_v55 = vsel %vm89_vm0, %v74_v51, 0.0  ;;  %v138_v56 = vsel %vm89_vm0, %v73_v52, 0.0  ;;  %v77_v0 = vmul.f32 %v1025_v1, %v38_v60  ;;  %v80_v6 = vmul.f32 %v1025_v1, %v41_v2  ;;  %v222_v34 = vld [vmem:[%s1880_s3 + $0x10] sm:$0xff]  ;;  %v224_v42 = vld [vmem:[%s1880_s3 + $0x20] sm:$0xff]  ;;  %v229_v48 = vld [vmem:[%s1880_s3 + $0x48] sm:$0xff] }
   0xd   :  { %106 = vadd.xlane.f32.xlu1 %v105_v19  ;;  %v147_v61 = vsel %vm89_vm0, %v76_v57, 0.0  ;;  %v144_v62 = vsel %vm89_vm0, %v75_v58, 0.0  ;;  %v153_v4 = vsel %vm89_vm0, %v78_v63, 0.0  ;;  %v79_v7 = vmul.f32 %v1025_v1, %v40_v3  ;;  %v226_v46 = vld [vmem:[%s1880_s3 + $0x30] sm:$0xff]  ;;  %v231_v54 = vld [vmem:[%s1880_s3 + $0x58] sm:$0xff]  ;;  %v232_v3 = vld [vmem:[%s1880_s3 + $0x60] sm:$0xff] }
   0xe   :  { %103 = vadd.xlane.f32.xlu0 %v102_v20  ;;  %v150_v5 = vsel %vm89_vm0, %v77_v0, 0.0  ;;  %v159_v10 = vsel %vm89_vm0, %v80_v6, 0.0  ;;  %v82_v12 = vmul.f32 %v1025_v1, %v43_v8  ;;  %v81_v13 = vmul.f32 %v1025_v1, %v42_v9  ;;  %v47_v20 = vld [vmem:[%s1878_s0 + $0xe8] sm:$0xff]  ;;  %v230_v58 = vld [vmem:[%s1880_s3 + $0x50] sm:$0xff] }
   0xf   :  { %v156_v11 = vsel %vm89_vm0, %v79_v7, 0.0  ;;  %v84_v18 = vmul.f32 %v1025_v1, %v45_v14  ;;  %v83_v19 = vmul.f32 %v1025_v1, %v44_v15  ;;  %v86_v24 = vmul.f32 %v1025_v1, %v47_v20  ;;  %v235_v7 = vld [vmem:[%s1880_s3 + $0x78] sm:$0xff]  ;;  %v237_v15 = vld [vmem:[%s1880_s3 + $0x88] sm:$0xff] }
  0x10   :  { %v165_v16 = vsel %vm89_vm0, %v82_v12, 0.0  ;;  %v162_v17 = vsel %vm89_vm0, %v81_v13, 0.0  ;;  %v318_v36 = vsub.f32 1.0, %v222_v34  ;;  %738 = vlog2.f32 %v222_v34 }
  0x11   :  { %112 = vadd.xlane.f32.xlu1 %v111_v25  ;;  %v171_v22 = vsel %vm89_vm0, %v84_v18, 0.0  ;;  %v168_v23 = vsel %vm89_vm0, %v83_v19, 0.0  ;;  %v85_v25 = vmul.f32 %v1025_v1, %v46_v21  ;;  %v177_v28 = vsel %vm89_vm0, %v86_v24, 0.0  ;;  %v236_v19 = vld [vmem:[%s1880_s3 + $0x80] sm:$0xff] }
  0x12   :  { %109 = vadd.xlane.f32.xlu0 %v108_v26  ;;  %v49_v26 = vld [vmem:[%s1878_s0 + $0xf8] sm:$0xff]  ;;  %740 = vlog2.f32 %v220_v35  ;;  %v320_v45 = vsub.f32 1.0, %v224_v42  ;;  %v325_v52 = vsub.f32 1.0, %v229_v48  ;;  %v327_v60 = vsub.f32 1.0, %v231_v54 }
  0x13   :  { %v174_v29 = vsel %vm89_vm0, %v85_v25, 0.0  ;;  %v88_v30 = vmul.f32 %v1025_v1, %v49_v26  ;;  %742 = vlog2.f32 %v318_v36  ;;  %v326_v0 = vsub.f32 1.0, %v230_v58 }
  0x14   :  { %v328_v9 = vsub.f32 1.0, %v232_v3  ;;  %v331_v13 = vsub.f32 1.0, %v235_v7  ;;  %v333_v21 = vsub.f32 1.0, %v237_v15  ;;  %v332_v25 = vsub.f32 1.0, %v236_v19 }
  0x15   :  { %118 = vadd.xlane.f32.xlu1 %v117_v31  ;;  %v87_v31 = vmul.f32 %v1025_v1, %v48_v27  ;;  %v223_v1 = vld [vmem:[%s1880_s3 + $0x18] sm:$0xff]  ;;  %v238_v27 = vld [vmem:[%s1880_s3 + $0x90] sm:$0xff] }
  0x16   :  { %115 = vadd.xlane.f32.xlu0 %v114_v32  ;;  %v183_v32 = vsel %vm89_vm0, %v88_v30, 0.0  ;;  %v319_v39 = vsub.f32 1.0, %v223_v1 }
  0x17   :  { %v180_v33 = vsel %vm89_vm0, %v87_v31, 0.0  ;;  %v241_v31 = vld [vmem:[%s1880_s3 + $0xa8] sm:$0xff] }
  0x19   :  { %124 = vadd.xlane.f32.xlu1 %v123_v37  ;;  %v316_v37 = vsub.f32 1.0, %v220_v35  ;;  %v240_v35 = vld [vmem:[%s1880_s3 + $0xa0] sm:$0xff] }
  0x1a   :  { %121 = vadd.xlane.f32.xlu0 %v120_v38  ;;  %v221_v38 = vld [vmem:[%s1880_s3 + $0x8] sm:$0xff] }
  0x1b   :  { %744 = vlog2.f32 %v316_v37  ;;  %v317_v41 = vsub.f32 1.0, %v221_v38 }
  0x1c   :  { %746 = vlog2.f32 %v223_v1  ;;  %v337_v1 = vsub.f32 1.0, %v241_v31 }
  0x1d   :  { %130 = vadd.xlane.f32.xlu1 %v129_v43  ;;  %748 = vlog2.f32 %v319_v39  ;;  %v321_v43 = vsub.f32 1.0, %v225_v40  ;;  %v1214_v51 = vpop.eup %738 }
  0x1e   :  { %127 = vadd.xlane.f32.xlu0 %v126_v44  ;;  %750 = vlog2.f32 %v221_v38  ;;  %v227_v44 = vld [vmem:[%s1880_s3 + $0x38] sm:$0xff] }
  0x1f   :  { %752 = vlog2.f32 %v317_v41  ;;  %v323_v47 = vsub.f32 1.0, %v227_v44  ;;  %v1216_v53 = vpop.eup %740  ;;  %v243_v38 = vld [vmem:[%s1880_s3 + $0xb8] sm:$0xff] }
  0x20   :  { %754 = vlog2.f32 %v225_v40  ;;  %v336_v40 = vsub.f32 1.0, %v240_v35 }
  0x21   :  { %136 = vadd.xlane.f32.xlu1 %v135_v49  ;;  %756 = vlog2.f32 %v321_v43  ;;  %v322_v49 = vsub.f32 1.0, %v226_v46 }
  0x22   :  { %133 = vadd.xlane.f32.xlu0 %v132_v50  ;;  %758 = vlog2.f32 %v224_v42  ;;  %v228_v50 = vld [vmem:[%s1880_s3 + $0x40] sm:$0xff]  ;;  %v242_v42 = vld [vmem:[%s1880_s3 + $0xb0] sm:$0xff] }
  0x23   :  { %760 = vlog2.f32 %v320_v45 }
  0x24   :  { %762 = vlog2.f32 %v227_v44  ;;  %v339_v44 = vsub.f32 1.0, %v243_v38 }
  0x25   :  { %142 = vadd.xlane.f32.xlu1 %v141_v55  ;;  %764 = vlog2.f32 %v323_v47  ;;  %v1221_v55 = vpop.eup %742 }
  0x26   :  { %139 = vadd.xlane.f32.xlu0 %v138_v56  ;;  %766 = vlog2.f32 %v226_v46  ;;  %v324_v56 = vsub.f32 1.0, %v228_v50  ;;  %v245_v46 = vld [vmem:[%s1880_s3 + $0xc8] sm:$0xff] }
  0x27   :  { %768 = vlog2.f32 %v322_v49  ;;  %v1325_v49 = vmul.f32 0.6931472, %v1216_v53 }
  0x28   :  { %v1223_v57 = vpop.eup %744  ;;  %770 = vlog2.f32 %v229_v48  ;;  %v1322_v48 = vmul.f32 0.6931472, %v1214_v51 }
  0x29   :  { %148 = vadd.xlane.f32.xlu1 %v147_v61  ;;  %v1228_v59 = vpop.eup %746  ;;  %772 = vlog2.f32 %v325_v52 }
  0x2a   :  { %145 = vadd.xlane.f32.xlu0 %v144_v62  ;;  %v1230_v61 = vpop.eup %748  ;;  %774 = vlog2.f32 %v228_v50  ;;  %v233_v62 = vld [vmem:[%s1880_s3 + $0x68] sm:$0xff]  ;;  %v338_v50 = vsub.f32 1.0, %v242_v42  ;;  %v1341_v53 = vmul.f32 0.6931472, %v1228_v59  ;;  %v247_v59 = vld [vmem:[%s1880_s3 + $0xd8] sm:$0xff] }
  0x2b   :  { %v1235_v63 = vpop.eup %750  ;;  %776 = vlog2.f32 %v324_v56  ;;  %v1333_v56 = vmul.f32 0.6931472, %v1223_v57  ;;  %v1351_v57 = vstv %s1881_s2 }
  0x2c   :  { %v1237_v2 = vpop.eup %752  ;;  %778 = vlog2.f32 %v231_v54  ;;  %v1330_v54 = vmul.f32 0.6931472, %v1221_v55 }
  0x2d   :  { %154 = vadd.xlane.f32.xlu1 %v153_v4  ;;  %v1242_v4 = vpop.eup %754  ;;  %780 = vlog2.f32 %v327_v60  ;;  %v1344_v60 = vmul.f32 0.6931472, %v1230_v61 }
  0x2e   :  { %151 = vadd.xlane.f32.xlu0 %v150_v5  ;;  %v329_v5 = vsub.f32 1.0, %v233_v62  ;;  %v1244_v6 = vpop.eup %756  ;;  %782 = vlog2.f32 %v230_v58  ;;  %v244_v58 = vld [vmem:[%s1880_s3 + $0xc0] sm:$0xff] }
  0x2f   :  { %v1249_v8 = vpop.eup %758  ;;  %784 = vlog2.f32 %v326_v0  ;;  %v1354_v0 = vmul.f32 0.6931472, %v1235_v63 }
  0x30   :  { %786 = vlog2.f32 %v233_v62  ;;  %v341_v62 = vsub.f32 1.0, %v245_v46 }
  0x31   :  { %160 = vadd.xlane.f32.xlu1 %v159_v10  ;;  %v1251_v10 = vpop.eup %760  ;;  %788 = vlog2.f32 %v329_v5  ;;  %v1365_v5 = vmul.f32 0.6931472, %v1242_v4  ;;  %v246_v4 = vld [vmem:[%s1880_s3 + $0xd0] sm:$0xff] }
  0x32   :  { %157 = vadd.xlane.f32.xlu0 %v156_v11  ;;  %v234_v11 = vld [vmem:[%s1880_s3 + $0x70] sm:$0xff]  ;;  %v1256_v12 = vpop.eup %762  ;;  %790 = vlog2.f32 %v232_v3  ;;  %v1357_v3 = vmul.f32 0.6931472, %v1237_v2  ;;  %v414_v2 = vsub.f32 %v1322_v48, %v1330_v54 }
  0x33   :  { %v1258_v14 = vpop.eup %764  ;;  %792 = vlog2.f32 %v328_v9  ;;  %v340_v9 = vsub.f32 1.0, %v244_v58 }
  0x34   :  { %794 = vlog2.f32 %v235_v7  ;;  %v1368_v7 = vmul.f32 0.6931472, %v1244_v6 }
  0x35   :  { %166 = vadd.xlane.f32.xlu1 %v165_v16  ;;  %v1263_v16 = vpop.eup %766  ;;  %796 = vlog2.f32 %v331_v13  ;;  %v1378_v13 = vmul.f32 0.6931472, %v1251_v10  ;;  %v412_v10 = vsub.f32 %v1325_v49, %v1333_v56 }
  0x36   :  { %163 = vadd.xlane.f32.xlu0 %v162_v17  ;;  %v330_v17 = vsub.f32 1.0, %v234_v11  ;;  %v1265_v18 = vpop.eup %768  ;;  %798 = vlog2.f32 %v234_v11  ;;  %v1375_v11 = vmul.f32 0.6931472, %v1249_v8 }
  0x37   :  { %v1270_v20 = vpop.eup %770 }
  0x38   :  { %800 = vlog2.f32 %v330_v17  ;;  %v1389_v17 = vmul.f32 0.6931472, %v1258_v14 }
  0x39   :  { %172 = vadd.xlane.f32.xlu1 %v171_v22  ;;  %v1272_v22 = vpop.eup %772  ;;  %802 = vlog2.f32 %v237_v15  ;;  %v1386_v15 = vmul.f32 0.6931472, %v1256_v12  ;;  %v249_v12 = vld [vmem:[%s1880_s3 + $0xe8] sm:$0xff] }
  0x3a   :  { %169 = vadd.xlane.f32.xlu0 %v168_v23  ;;  %v239_v23 = vld [vmem:[%s1880_s3 + $0x98] sm:$0xff]  ;;  %v1277_v24 = vpop.eup %774  ;;  %804 = vlog2.f32 %v333_v21  ;;  %v1396_v21 = vmul.f32 0.6931472, %v1263_v16 }
  0x3b   :  { %v1279_v26 = vpop.eup %776  ;;  %806 = vlog2.f32 %v236_v19  ;;  %v343_v19 = vsub.f32 1.0, %v247_v59  ;;  %v1437_v54 = vmul.f32 0.6931472, %v1277_v24 }
  0x3c   :  { %808 = vlog2.f32 %v332_v25  ;;  %v1407_v25 = vmul.f32 0.6931472, %v1270_v20  ;;  %v1440_v56 = vmul.f32 0.6931472, %v1279_v26 }
  0x3d   :  { %178 = vadd.xlane.f32.xlu1 %v177_v28  ;;  %v1284_v28 = vpop.eup %778  ;;  %810 = vlog2.f32 %v239_v23 }
  0x3e   :  { %175 = vadd.xlane.f32.xlu0 %v174_v29  ;;  %v335_v29 = vsub.f32 1.0, %v239_v23  ;;  %v1286_v30 = vpop.eup %780  ;;  %v1399_v23 = vmul.f32 0.6931472, %v1265_v18  ;;  %v415_v18 = vsub.f32 %v1341_v53, %v1344_v60 }
  0x3f   :  { %v1453_v26 = vmul.f32 0.6931472, %v1286_v30 }
  0x40   :  { %812 = vlog2.f32 %v335_v29  ;;  %v342_v29 = vsub.f32 1.0, %v246_v4  ;;  %v418_v48 = vsub.f32 %v1396_v21, %v1399_v23 }
  0x41   :  { %184 = vadd.xlane.f32.xlu1 %v183_v32  ;;  %v1291_v32 = vpop.eup %782  ;;  %814 = vlog2.f32 %v238_v27 }
  0x42   :  { %181 = vadd.xlane.f32.xlu0 %v180_v33  ;;  %v334_v33 = vsub.f32 1.0, %v238_v27  ;;  %v1293_v34 = vpop.eup %784  ;;  %v1410_v27 = vmul.f32 0.6931472, %v1272_v22  ;;  %v416_v22 = vsub.f32 %v1375_v11, %v1378_v13 }
  0x43   :  { %v1298_v36 = vpop.eup %786 }
  0x44   :  { %v1300_v37 = vpop.eup %788  ;;  %816 = vlog2.f32 %v334_v33  ;;  %v417_v33 = vsub.f32 %v1365_v5, %v1368_v7  ;;  %v1468_v30 = vmul.f32 0.6931472, %v1298_v36 }
  0x45   :  { %v1305_v39 = vpop.eup %790  ;;  %818 = vlog2.f32 %v241_v31  ;;  %v413_v31 = vsub.f32 %v1354_v0, %v1357_v3  ;;  %v248_v0 = vld [vmem:[%s1880_s3 + $0xe0] sm:$0xff] }
  0x46   :  { %v1307_v41 = vpop.eup %792  ;;  %820 = vlog2.f32 %v337_v1 }
  0x47   :  { %v1312_v43 = vpop.eup %794  ;;  %822 = vlog2.f32 %v240_v35 }
  0x48   :  { %v1314_v45 = vpop.eup %796  ;;  %824 = vlog2.f32 %v336_v40  ;;  %v345_v40 = vsub.f32 1.0, %v249_v12 }
  0x49   :  { %v1319_v47 = vpop.eup %798  ;;  %826 = vlog2.f32 %v243_v38  ;;  %v419_v38 = vsub.f32 %v1386_v15, %v1389_v17 }
  0x4a   :  { %v1327_v52 = vpop.eup %800  ;;  %828 = vlog2.f32 %v339_v44 }
  0x4b   :  { %v1338_v51 = vpop.eup %802  ;;  %830 = vlog2.f32 %v242_v42 }
  0x4c   :  { %v1346_v55 = vpop.eup %804  ;;  %832 = vlog2.f32 %v338_v50  ;;  %v421_v50 = vsub.f32 %v1407_v25, %v1410_v27 }
  0x4d   :  { %v1362_v61 = vpop.eup %806  ;;  %834 = vlog2.f32 %v245_v46 }
  0x4e   :  { %v1370_v63 = vpop.eup %808  ;;  %836 = vlog2.f32 %v341_v62  ;;  %v1445_v62 = vmul.f32 0.6931472, %v1284_v28 }
  0x4f   :  { %v1383_v6 = vpop.eup %810  ;;  %838 = vlog2.f32 %v244_v58  ;;  %v1558_v15 = vmul.f32 0.6931472, %v1370_v63 }
  0x50   :  { %v1391_v8 = vpop.eup %812  ;;  %840 = vlog2.f32 %v340_v9  ;;  %v1456_v9 = vmul.f32 0.6931472, %v1291_v32  ;;  %v1471_v32 = vmul.f32 0.6931472, %v1300_v37  ;;  %v1503_v37 = vmul.f32 0.6931472, %v1307_v41 }
  0x51   :  { %v1404_v14 = vpop.eup %814  ;;  %842 = vlog2.f32 %v247_v59 }
  0x52   :  { %v1412_v16 = vpop.eup %816  ;;  %844 = vlog2.f32 %v343_v19 }
  0x53   :  { %v1420_v35 = vpop.eup %818  ;;  %846 = vlog2.f32 %v246_v4  ;;  %v1588_v25 = vmul.f32 0.6931472, %v1412_v16 }
  0x54   :  { %v1426_v42 = vpop.eup %820  ;;  %848 = vlog2.f32 %v342_v29 }
  0x55   :  { %v1432_v49 = vpop.eup %822  ;;  %850 = vlog2.f32 %v249_v12 }
  0x56   :  { %v1442_v58 = vpop.eup %824  ;;  %852 = vlog2.f32 %v345_v40 }
  0x57   :  { %v1450_v3 = vpop.eup %826  ;;  %854 = vlog2.f32 %v248_v0 }
  0x58   :  { %v1461_v28 = vpop.eup %828 }
  0x59   :  { %v1465_v29 = vpop.eup %830 }
  0x8e   :  { %v98_v20 = vpop.xlane.xlu1 %97 }
  0x8f   :  { %v92_v1 = vpop.xlane.xlu0 %91  ;;  %v190_v44 = vadd.f32 %v1351_v57, %v98_v20  ;;  %v1473_v20 = vpop.eup %832 }
  0x90   :  { %v188_v46 = vadd.f32 %v1351_v57, %v92_v1 }
  0x91   :  { %v446_v53 = vadd.f32 %v414_v2, %v190_v44  ;;  %v1459_v2 = vmul.f32 0.6931472, %v1293_v34  ;;  %v344_v34 = vsub.f32 1.0, %v248_v0  ;;  %v1484_v0 = vmul.f32 0.6931472, %v1305_v39 }
  0x92   :  { %v444_v60 = vadd.f32 %v412_v10, %v188_v46  ;;  %v101_v24 = vpop.xlane.xlu1 %100  ;;  %v1477_v46 = vpop.eup %834 }
  0x93   :  { %v95_v59 = vpop.xlane.xlu0 %94  ;;  %v708_v4 = vmul.f32 -1.442695, %v446_v53  ;;  %v191_v10 = vadd.f32 %v1351_v57, %v101_v24 }
  0x94   :  { %v706_v19 = vmul.f32 -1.442695, %v444_v60  ;;  %v189_v12 = vadd.f32 %v1351_v57, %v95_v59 }
  0x95   :  { %856 = vpow2.f32 %v708_v4  ;;  %v447_v1 = vadd.f32 %v415_v18, %v191_v10  ;;  %v251_v18 = vld [vmem:[%s1880_s3 + $0xf8] sm:$0xff]  ;;  %v1496_v10 = vld [vmem:[%s1880_s3 + $0xf0] sm:$0xff] }
  0x96   :  { %v445_v40 = vadd.f32 %v413_v31, %v189_v12  ;;  %858 = vpow2.f32 %v706_v19  ;;  %v107_v53 = vpop.xlane.xlu1 %106  ;;  %v1489_v31 = vpop.eup %836  ;;  %v347_v36 = vsub.f32 1.0, %v251_v18 }
  0x97   :  { %v104_v60 = vpop.xlane.xlu0 %103  ;;  %v709_v24 = vmul.f32 -1.442695, %v447_v1  ;;  %v193_v4 = vadd.f32 %v1351_v57, %v107_v53  ;;  %v1498_v12 = vpop.eup %838  ;;  %v1506_v1 = vmul.f32 0.6931472, %v1312_v43  ;;  %860 = vlog2.f32 %v344_v34 }
  0x98   :  { %v707_v59 = vmul.f32 -1.442695, %v445_v40  ;;  %v192_v19 = vadd.f32 %v1351_v57, %v104_v60  ;;  %v1508_v40 = vpop.eup %840  ;;  %v1519_v43 = vmul.f32 0.6931472, %v1314_v45  ;;  %v1522_v34 = vmul.f32 0.6931472, %v1319_v47 }
  0x99   :  { %862 = vpow2.f32 %v709_v24  ;;  %v449_v53 = vadd.f32 %v417_v33, %v193_v4  ;;  %v1516_v39 = vpop.eup %842  ;;  %v346_v24 = vsub.f32 1.0, %v1496_v10  ;;  %v1535_v45 = vmul.f32 0.6931472, %v1338_v51 }
  0x9a   :  { %v448_v60 = vadd.f32 %v416_v22, %v192_v19  ;;  %864 = vpow2.f32 %v707_v59  ;;  %v113_v41 = vpop.xlane.xlu1 %112  ;;  %v1525_v5 = vpop.eup %844  ;;  %v1532_v59 = vmul.f32 0.6931472, %v1327_v52  ;;  %v1538_v47 = vmul.f32 0.6931472, %v1346_v55 }
  0x9b   :  { %v110_v44 = vpop.xlane.xlu0 %109  ;;  %v711_v7 = vmul.f32 -1.442695, %v449_v53  ;;  %v195_v11 = vadd.f32 %v1351_v57, %v113_v41  ;;  %v1529_v22 = vpop.eup %846  ;;  %866 = vlog2.f32 %v251_v18  ;;  %v424_v52 = vsub.f32 %v1484_v0, %v1503_v37 }
  0x9c   :  { %v710_v33 = vmul.f32 -1.442695, %v448_v60  ;;  %v194_v13 = vadd.f32 %v1351_v57, %v110_v44  ;;  %v1540_v4 = vpop.eup %848  ;;  %v427_v18 = vsub.f32 %v1506_v1, %v1519_v43  ;;  %v1555_v60 = vmul.f32 0.6931472, %v1362_v61 }
  0x9d   :  { %868 = vpow2.f32 %v711_v7  ;;  %v451_v19 = vadd.f32 %v419_v38, %v195_v11  ;;  %v1550_v51 = vpop.eup %850  ;;  %v426_v41 = vsub.f32 %v1522_v34, %v1532_v59  ;;  %v429_v7 = vsub.f32 %v1535_v45, %v1538_v47 }
  0x9e   :  { %v450_v44 = vadd.f32 %v418_v48, %v194_v13  ;;  %870 = vpow2.f32 %v710_v33  ;;  %v119_v55 = vpop.xlane.xlu1 %118  ;;  %v1560_v17 = vpop.eup %852  ;;  %v1569_v61 = vmul.f32 0.6931472, %v1383_v6  ;;  %v1883_v11 = vsub.f32 %v1437_v54, %v1440_v56 }
  0x9f   :  { %v116_v53 = vpop.xlane.xlu0 %115  ;;  %v713_v21 = vmul.f32 -1.442695, %v451_v19  ;;  %v197_v38 = vadd.f32 %v1351_v57, %v119_v55  ;;  %872 = vlog2.f32 %v347_v36  ;;  %v1571_v63 = vpop.eup %854  ;;  %v1580_v19 = vmul.f32 0.6931472, %v1391_v8 }
  0xa0   :  { %v712_v23 = vmul.f32 -1.442695, %v450_v44  ;;  %v196_v48 = vadd.f32 %v1351_v57, %v116_v53  ;;  %v428_v36 = vsub.f32 %v1555_v60, %v1558_v15  ;;  %v1585_v53 = vmul.f32 0.6931472, %v1404_v14 }
  0xa1   :  { %874 = vpow2.f32 %v713_v21  ;;  %v453_v33 = vadd.f32 %v421_v50, %v197_v38  ;;  %v1884_v14 = vsub.f32 %v1445_v62, %v1453_v26  ;;  %v1609_v62 = vmul.f32 0.6931472, %v1426_v42 }
  0xa2   :  { %v452_v13 = vadd.f32 %v1883_v11, %v196_v48  ;;  %v857_v44 = vpop.eup %856  ;;  %876 = vpow2.f32 %v712_v23  ;;  %v125_v55 = vpop.xlane.xlu1 %124  ;;  %v431_v48 = vsub.f32 %v1569_v61, %v1580_v19  ;;  %v1651_v1 = vmul.f32 0.6931472, %v1473_v20 }
  0xa3   :  { %v122_v6 = vpop.xlane.xlu0 %121  ;;  %v859_v27 = vpop.eup %858  ;;  %v574_v50 = vadd.f32 1.0, %v857_v44  ;;  %v715_v54 = vmul.f32 -1.442695, %v453_v33  ;;  %v199_v56 = vadd.f32 %v1351_v57, %v125_v55  ;;  %878 = vlog2.f32 %v1496_v10 }
  0xa4   :  { %v572_v8 = vadd.f32 1.0, %v859_v27  ;;  %v714_v21 = vmul.f32 -1.442695, %v452_v13  ;;  %v198_v23 = vadd.f32 %v1351_v57, %v122_v6  ;;  %880 = vlog2.f32 %v346_v24  ;;  %v1593_v38 = vpop.eup %860 }
  0xa5   :  { %882 = vrcp.f32 %v574_v50  ;;  %v455_v16 = vadd.f32 %v1884_v14, %v199_v56  ;;  %v1601_v33 = vmul.f32 0.6931472, %v1420_v35  ;;  %v1885_v10 = vsub.f32 %v1456_v9, %v1459_v2 }
  0xa6   :  { %v863_v11 = vpop.eup %862  ;;  %884 = vrcp.f32 %v572_v8  ;;  %v131_v24 = vpop.xlane.xlu1 %130  ;;  %v430_v55 = vsub.f32 %v1585_v53, %v1588_v25  ;;  %v1886_v8 = vsub.f32 %v1468_v30, %v1471_v32  ;;  %v1630_v30 = vmul.f32 0.6931472, %v1450_v3 }
  0xa7   :  { %v454_v13 = vadd.f32 %v1885_v10, %v198_v23  ;;  %v128_v44 = vpop.xlane.xlu0 %127  ;;  %v865_v26 = vpop.eup %864  ;;  %v575_v6 = vadd.f32 1.0, %v863_v11  ;;  %886 = vpow2.f32 %v715_v54  ;;  %v717_v27 = vmul.f32 -1.442695, %v455_v16 }
  0xa8   :  { %v201_v35 = vadd.f32 %v1351_v57, %v131_v24  ;;  %v573_v50 = vadd.f32 1.0, %v865_v26  ;;  %888 = vpow2.f32 %v714_v21  ;;  %v200_v9 = vadd.f32 %v1351_v57, %v128_v44  ;;  %v1613_v2 = vpop.eup %866 }
  0xa9   :  { %v716_v56 = vmul.f32 -1.442695, %v454_v13  ;;  %890 = vrcp.f32 %v575_v6  ;;  %v1619_v23 = vmul.f32 0.6931472, %v1432_v49  ;;  %v1622_v54 = vmul.f32 0.6931472, %v1442_v58 }
  0xaa   :  { %v457_v42 = vadd.f32 %v1886_v8, %v201_v35  ;;  %v869_v14 = vpop.eup %868  ;;  %892 = vrcp.f32 %v573_v50  ;;  %v456_v21 = vadd.f32 %v424_v52, %v200_v9  ;;  %v137_v16 = vpop.xlane.xlu1 %136  ;;  %v433_v10 = vsub.f32 %v1601_v33, %v1609_v62 }
  0xab   :  { %v134_v11 = vpop.xlane.xlu0 %133  ;;  %v871_v32 = vpop.eup %870  ;;  %v577_v49 = vadd.f32 1.0, %v869_v14  ;;  %894 = vpow2.f32 %v717_v27  ;;  %v203_v58 = vadd.f32 %v1351_v57, %v137_v16  ;;  %v432_v3 = vsub.f32 %v1619_v23, %v1622_v54 }
  0xac   :  { %v719_v13 = vmul.f32 -1.442695, %v457_v42  ;;  %v576_v24 = vadd.f32 1.0, %v871_v32  ;;  %896 = vpow2.f32 %v716_v56  ;;  %v718_v44 = vmul.f32 -1.442695, %v456_v21  ;;  %v1634_v0 = vpop.eup %872 }
  0xad   :  { %v202_v37 = vadd.f32 %v1351_v57, %v134_v11  ;;  %898 = vrcp.f32 %v577_v49  ;;  %v459_v52 = vadd.f32 %v427_v18, %v203_v58  ;;  %v1642_v26 = vmul.f32 0.6931472, %v1461_v28 }
  0xae   :  { %v875_v6 = vpop.eup %874  ;;  %900 = vrcp.f32 %v576_v24  ;;  %v143_v35 = vpop.xlane.xlu1 %142  ;;  %v1648_v56 = vmul.f32 0.6931472, %v1465_v29  ;;  %v1665_v14 = vmul.f32 0.6931472, %v1477_v46  ;;  %v1673_v45 = vmul.f32 0.6931472, %v1489_v31 }
  0xaf   :  { %v458_v27 = vadd.f32 %v426_v41, %v202_v37  ;;  %v140_v50 = vpop.xlane.xlu0 %139  ;;  %v877_v43 = vpop.eup %876  ;;  %v579_v18 = vadd.f32 1.0, %v875_v6  ;;  %902 = vpow2.f32 %v719_v13  ;;  %v721_v9 = vmul.f32 -1.442695, %v459_v52 }
  0xb0   :  { %v205_v28 = vadd.f32 %v1351_v57, %v143_v35  ;;  %v1654_v8 = vpop.eup %878  ;;  %v578_v42 = vadd.f32 1.0, %v877_v43  ;;  %904 = vpow2.f32 %v718_v44  ;;  %v204_v59 = vadd.f32 %v1351_v57, %v140_v50 }
  0xb1   :  { %v720_v34 = vmul.f32 -1.442695, %v458_v27  ;;  %v1657_v41 = vpop.eup %880  ;;  %906 = vrcp.f32 %v579_v18  ;;  %v435_v20 = vsub.f32 %v1630_v30, %v1642_v26  ;;  %v434_v49 = vsub.f32 %v1648_v56, %v1651_v1 }
  0xb2   :  { %v461_v29 = vadd.f32 %v429_v7, %v205_v28  ;;  %v883_v21 = vpop.eup %882  ;;  %908 = vrcp.f32 %v578_v42  ;;  %v460_v16 = vadd.f32 %v428_v36, %v204_v59  ;;  %v149_v11 = vpop.xlane.xlu1 %148  ;;  %v1686_v36 = vmul.f32 0.6931472, %v1498_v12 }
  0xb3   :  { %v146_v32 = vpop.xlane.xlu0 %145  ;;  %v885_v47 = vpop.eup %884  ;;  %671 = vst.msk [vmem:[%s1882_s4 + $0x10] sm:$0xff] %vm668_vm1, %v883_v21  ;;  %910 = vpow2.f32 %v721_v9  ;;  %v207_v7 = vadd.f32 %v1351_v57, %v149_v11  ;;  %v1689_v13 = vmul.f32 0.6931472, %v1508_v40  ;;  %v437_v40 = vsub.f32 %v1665_v14, %v1673_v45 }
  0xb4   :  { %v723_v46 = vmul.f32 -1.442695, %v461_v29  ;;  %v206_v60 = vadd.f32 %v1351_v57, %v146_v32  ;;  %v887_v15 = vpop.eup %886  ;;  %669 = vst.msk [vmem:[%s1882_s4] sm:$0xff] %vm668_vm1, %v885_v47  ;;  %912 = vpow2.f32 %v720_v34  ;;  %v722_v31 = vmul.f32 -1.442695, %v460_v16 }
  0xb5   :  { %v889_v58 = vpop.eup %888  ;;  %v581_v24 = vadd.f32 1.0, %v887_v15  ;;  %v463_v44 = vadd.f32 %v431_v48, %v207_v7  ;;  %v1700_v35 = vmul.f32 0.6931472, %v1516_v39  ;;  %v436_v48 = vsub.f32 %v1686_v36, %v1689_v13 }
  0xb6   :  { %914 = vpow2.f32 %v723_v46  ;;  %v462_v37 = vadd.f32 %v430_v55, %v206_v60  ;;  %v891_v52 = vpop.eup %890  ;;  %v580_v6 = vadd.f32 1.0, %v889_v58  ;;  %v155_v27 = vpop.xlane.xlu1 %154  ;;  %v1715_v55 = vmul.f32 0.6931472, %v1525_v5 }
  0xb7   :  { %916 = vpow2.f32 %v722_v31  ;;  %v152_v12 = vpop.xlane.xlu0 %151  ;;  %v893_v50 = vpop.eup %892  ;;  %672 = vst.msk [vmem:[%s1882_s4 + $0x18] sm:$0xff] %vm668_vm1, %v891_v52  ;;  %v725_v61 = vmul.f32 -1.442695, %v463_v44  ;;  %v209_v53 = vadd.f32 %v1351_v57, %v155_v27  ;;  %v1721_v28 = vmul.f32 0.6931472, %v1529_v22 }
  0xb8   :  { %918 = vrcp.f32 %v581_v24  ;;  %v724_v19 = vmul.f32 -1.442695, %v462_v37  ;;  %v895_v25 = vpop.eup %894  ;;  %670 = vst.msk [vmem:[%s1882_s4 + $0x8] sm:$0xff] %vm668_vm1, %v893_v50  ;;  %v208_v39 = vadd.f32 %v1351_v57, %v152_v12  ;;  %v1727_v21 = vmul.f32 0.6931472, %v1540_v4 }
  0xb9   :  { %920 = vrcp.f32 %v580_v6  ;;  %v897_v43 = vpop.eup %896  ;;  %v583_v18 = vadd.f32 1.0, %v895_v25  ;;  %v465_v9 = vadd.f32 %v433_v10, %v209_v53  ;;  %v1740_v23 = vmul.f32 0.6931472, %v1550_v51 }
  0xba   :  { %922 = vpow2.f32 %v725_v61  ;;  %v899_v42 = vpop.eup %898  ;;  %v582_v34 = vadd.f32 1.0, %v897_v43  ;;  %v464_v59 = vadd.f32 %v432_v3, %v208_v39  ;;  %v161_v29 = vpop.xlane.xlu1 %160  ;;  %v1743_v54 = vmul.f32 0.6931472, %v1560_v17 }
  0xbb   :  { %924 = vpow2.f32 %v724_v19  ;;  %v158_v5 = vpop.xlane.xlu0 %157  ;;  %v901_v16 = vpop.eup %900  ;;  %674 = vst.msk [vmem:[%s1882_s4 + $0x28] sm:$0xff] %vm668_vm1, %v899_v42  ;;  %v727_v22 = vmul.f32 -1.442695, %v465_v9  ;;  %v211_v33 = vadd.f32 %v1351_v57, %v161_v29  ;;  %v439_v17 = vsub.f32 %v1700_v35, %v1715_v55 }
  0xbc   :  { %926 = vrcp.f32 %v583_v18  ;;  %v210_v62 = vadd.f32 %v1351_v57, %v158_v5  ;;  %v903_v10 = vpop.eup %902  ;;  %673 = vst.msk [vmem:[%s1882_s4 + $0x20] sm:$0xff] %vm668_vm1, %v901_v16  ;;  %v726_v4 = vmul.f32 -1.442695, %v464_v59  ;;  %v438_v15 = vsub.f32 %v1721_v28, %v1727_v21 }
  0xbd   :  { %928 = vrcp.f32 %v582_v34  ;;  %v905_v3 = vpop.eup %904  ;;  %v585_v11 = vadd.f32 1.0, %v903_v10  ;;  %v467_v32 = vadd.f32 %v435_v20, %v211_v33  ;;  %v309_v36 = vmul.f32 0.6931472, %v1571_v63 }
  0xbe   :  { %930 = vpow2.f32 %v727_v22  ;;  %v466_v47 = vadd.f32 %v434_v49, %v210_v62  ;;  %v907_v46 = vpop.eup %906  ;;  %v584_v7 = vadd.f32 1.0, %v905_v3  ;;  %v167_v60 = vpop.xlane.xlu1 %166  ;;  %v441_v49 = vsub.f32 %v1740_v23, %v1743_v54 }
  0xbf   :  { %932 = vpow2.f32 %v726_v4  ;;  %v164_v51 = vpop.xlane.xlu0 %163  ;;  %v909_v31 = vpop.eup %908  ;;  %676 = vst.msk [vmem:[%s1882_s4 + $0x38] sm:$0xff] %vm668_vm1, %v907_v46  ;;  %v729_v30 = vmul.f32 -1.442695, %v467_v32  ;;  %v213_v56 = vadd.f32 %v1351_v57, %v167_v60  ;;  %v405_v44 = vmul.f32 0.6931472, %v1593_v38 }
  0xc0   :  { %934 = vrcp.f32 %v585_v11  ;;  %v728_v26 = vmul.f32 -1.442695, %v466_v47  ;;  %v911_v1 = vpop.eup %910  ;;  %675 = vst.msk [vmem:[%s1882_s4 + $0x30] sm:$0xff] %vm668_vm1, %v909_v31  ;;  %v212_v20 = vadd.f32 %v1351_v57, %v164_v51  ;;  %v315_v35 = vmul.f32 0.6931472, %v1613_v2 }
  0xc1   :  { %936 = vrcp.f32 %v584_v7  ;;  %v913_v13 = vpop.eup %912  ;;  %v587_v58 = vadd.f32 1.0, %v911_v1  ;;  %v469_v24 = vadd.f32 %v437_v40, %v213_v56  ;;  %v440_v25 = vsub.f32 %v309_v36, %v405_v44 }
  0xc2   :  { %938 = vpow2.f32 %v729_v30  ;;  %v586_v52 = vadd.f32 1.0, %v913_v13  ;;  %v468_v6 = vadd.f32 %v436_v48, %v212_v20  ;;  %v173_v27 = vpop.xlane.xlu1 %172  ;;  %v411_v39 = vmul.f32 0.6931472, %v1634_v0 }
  0xc3   :  { %v915_v37 = vpop.eup %914  ;;  %940 = vpow2.f32 %v728_v26  ;;  %v170_v12 = vpop.xlane.xlu0 %169  ;;  %v731_v61 = vmul.f32 -1.442695, %v469_v24  ;;  %v215_v19 = vadd.f32 %v1351_v57, %v173_v27  ;;  %v313_v9 = vmul.f32 0.6931472, %v1654_v8 }
  0xc4   :  { %v917_v50 = vpop.eup %916  ;;  %942 = vrcp.f32 %v587_v58  ;;  %v589_v63 = vadd.f32 1.0, %v915_v37  ;;  %v730_v45 = vmul.f32 -1.442695, %v468_v6  ;;  %v214_v38 = vadd.f32 %v1351_v57, %v170_v12 }
  0xc5   :  { %v919_v53 = vpop.eup %918  ;;  %944 = vrcp.f32 %v586_v52  ;;  %v588_v14 = vadd.f32 1.0, %v917_v50  ;;  %v471_v2 = vadd.f32 %v439_v17, %v215_v19  ;;  %v409_v28 = vmul.f32 0.6931472, %v1657_v41 }
  0xc6   :  { %v921_v40 = vpop.eup %920  ;;  %678 = vst.msk [vmem:[%s1882_s4 + $0x48] sm:$0xff] %vm668_vm1, %v919_v53  ;;  %946 = vrcp.f32 %v589_v63  ;;  %v470_v55 = vadd.f32 %v438_v15, %v214_v38  ;;  %v179_v43 = vpop.xlane.xlu1 %178  ;;  %v443_v41 = vsub.f32 %v315_v35, %v411_v39 }
  0xc7   :  { %v923_v48 = vpop.eup %922  ;;  %677 = vst.msk [vmem:[%s1882_s4 + $0x40] sm:$0xff] %vm668_vm1, %v921_v40  ;;  %948 = vrcp.f32 %v588_v14  ;;  %v176_v18 = vpop.xlane.xlu0 %175  ;;  %v733_v59 = vmul.f32 -1.442695, %v471_v2  ;;  %v217_v0 = vadd.f32 %v1351_v57, %v179_v43  ;;  %v442_v4 = vsub.f32 %v313_v9, %v409_v28 }
  0xc8   :  { %v925_v42 = vpop.eup %924  ;;  %v591_v34 = vadd.f32 1.0, %v923_v48  ;;  %950 = vpow2.f32 %v731_v61  ;;  %v732_v21 = vmul.f32 -1.442695, %v470_v55  ;;  %v216_v16 = vadd.f32 %v1351_v57, %v176_v18 }
  0xc9   :  { %v927_v29 = vpop.eup %926  ;;  %v590_v5 = vadd.f32 1.0, %v925_v42  ;;  %952 = vpow2.f32 %v730_v45  ;;  %v473_v8 = vadd.f32 %v441_v49, %v217_v0 }
  0xca   :  { %v929_v22 = vpop.eup %928  ;;  %680 = vst.msk [vmem:[%s1882_s4 + $0x58] sm:$0xff] %vm668_vm1, %v927_v29  ;;  %954 = vrcp.f32 %v591_v34  ;;  %v472_v62 = vadd.f32 %v440_v25, %v216_v16  ;;  %v185_v10 = vpop.xlane.xlu1 %184 }
  0xcb   :  { %v931_v33 = vpop.eup %930  ;;  %679 = vst.msk [vmem:[%s1882_s4 + $0x50] sm:$0xff] %vm668_vm1, %v929_v22  ;;  %956 = vrcp.f32 %v590_v5  ;;  %v182_v23 = vpop.xlane.xlu0 %181  ;;  %v735_v11 = vmul.f32 -1.442695, %v473_v8  ;;  %v219_v32 = vadd.f32 %v1351_v57, %v185_v10 }
  0xcc   :  { %v933_v54 = vpop.eup %932  ;;  %v593_v3 = vadd.f32 1.0, %v931_v33  ;;  %958 = vpow2.f32 %v733_v59  ;;  %v734_v7 = vmul.f32 -1.442695, %v472_v62  ;;  %v218_v60 = vadd.f32 %v1351_v57, %v182_v23 }
  0xcd   :  { %v935_v47 = vpop.eup %934  ;;  %v592_v46 = vadd.f32 1.0, %v933_v54  ;;  %960 = vpow2.f32 %v732_v21  ;;  %v475_v17 = vadd.f32 %v443_v41, %v219_v32 }
  0xce   :  { %v937_v51 = vpop.eup %936  ;;  %682 = vst.msk [vmem:[%s1882_s4 + $0x68] sm:$0xff] %vm668_vm1, %v935_v47  ;;  %962 = vrcp.f32 %v593_v3  ;;  %v474_v31 = vadd.f32 %v442_v4, %v218_v60 }
  0xcf   :  { %v939_v15 = vpop.eup %938  ;;  %681 = vst.msk [vmem:[%s1882_s4 + $0x60] sm:$0xff] %vm668_vm1, %v937_v51  ;;  %964 = vrcp.f32 %v592_v46  ;;  %v737_v57 = vmul.f32 -1.442695, %v475_v17 }
  0xd0   :  { %v941_v30 = vpop.eup %940  ;;  %v595_v26 = vadd.f32 1.0, %v939_v15  ;;  %966 = vpow2.f32 %v735_v11  ;;  %v736_v20 = vmul.f32 -1.442695, %v474_v31 }
  0xd1   :  { %v943_v56 = vpop.eup %942  ;;  %v594_v1 = vadd.f32 1.0, %v941_v30  ;;  %968 = vpow2.f32 %v734_v7 }
  0xd2   :  { %v945_v49 = vpop.eup %944  ;;  %684 = vst.msk [vmem:[%s1882_s4 + $0x78] sm:$0xff] %vm668_vm1, %v943_v56  ;;  %970 = vrcp.f32 %v595_v26 }
  0xd3   :  { %v947_v36 = vpop.eup %946  ;;  %683 = vst.msk [vmem:[%s1882_s4 + $0x70] sm:$0xff] %vm668_vm1, %v945_v49  ;;  %972 = vrcp.f32 %v594_v1 }
  0xd4   :  { %v949_v13 = vpop.eup %948  ;;  %686 = vst.msk [vmem:[%s1882_s4 + $0x88] sm:$0xff] %vm668_vm1, %v947_v36  ;;  %974 = vpow2.f32 %v737_v57 }
  0xd5   :  { %v951_v58 = vpop.eup %950  ;;  %685 = vst.msk [vmem:[%s1882_s4 + $0x80] sm:$0xff] %vm668_vm1, %v949_v13  ;;  %976 = vpow2.f32 %v736_v20 }
  0xd6   :  { %v953_v24 = vpop.eup %952  ;;  %v597_v44 = vadd.f32 1.0, %v951_v58 }
  0xd7   :  { %v955_v37 = vpop.eup %954  ;;  %v596_v52 = vadd.f32 1.0, %v953_v24 }
  0xd8   :  { %v957_v6 = vpop.eup %956  ;;  %688 = vst.msk [vmem:[%s1882_s4 + $0x98] sm:$0xff] %vm668_vm1, %v955_v37  ;;  %978 = vrcp.f32 %v597_v44 }
  0xd9   :  { %v959_v27 = vpop.eup %958  ;;  %687 = vst.msk [vmem:[%s1882_s4 + $0x90] sm:$0xff] %vm668_vm1, %v957_v6  ;;  %980 = vrcp.f32 %v596_v52 }
  0xda   :  { %v961_v12 = vpop.eup %960  ;;  %v599_v35 = vadd.f32 1.0, %v959_v27 }
  0xdb   :  { %v963_v50 = vpop.eup %962  ;;  %v598_v63 = vadd.f32 1.0, %v961_v12 }
  0xdc   :  { %v965_v61 = vpop.eup %964  ;;  %690 = vst.msk [vmem:[%s1882_s4 + $0xa8] sm:$0xff] %vm668_vm1, %v963_v50  ;;  %982 = vrcp.f32 %v599_v35 }
  0xdd   :  { %v967_v19 = vpop.eup %966  ;;  %689 = vst.msk [vmem:[%s1882_s4 + $0xa0] sm:$0xff] %vm668_vm1, %v965_v61  ;;  %984 = vrcp.f32 %v598_v63 }
  0xde   :  { %v969_v53 = vpop.eup %968  ;;  %v601_v14 = vadd.f32 1.0, %v967_v19 }
  0xdf   :  { %v971_v45 = vpop.eup %970  ;;  %v600_v38 = vadd.f32 1.0, %v969_v53 }
  0xe0   :  { %v973_v40 = vpop.eup %972  ;;  %692 = vst.msk [vmem:[%s1882_s4 + $0xb8] sm:$0xff] %vm668_vm1, %v971_v45  ;;  %986 = vrcp.f32 %v601_v14 }
  0xe1   :  { %v975_v2 = vpop.eup %974  ;;  %691 = vst.msk [vmem:[%s1882_s4 + $0xb0] sm:$0xff] %vm668_vm1, %v973_v40  ;;  %988 = vrcp.f32 %v600_v38 }
  0xe2   :  { %v977_v25 = vpop.eup %976  ;;  %v603_v39 = vadd.f32 1.0, %v975_v2 }
  0xe3   :  { %v602_v48 = vadd.f32 1.0, %v977_v25 }
  0xe4   :  { %990 = vrcp.f32 %v603_v39 }
  0xe5   :  { %v979_v55 = vpop.eup %978  ;;  %992 = vrcp.f32 %v602_v48 }
  0xe6   :  { %v981_v43 = vpop.eup %980  ;;  %694 = vst.msk [vmem:[%s1882_s4 + $0xc8] sm:$0xff] %vm668_vm1, %v979_v55 }
  0xe7   :  { %693 = vst.msk [vmem:[%s1882_s4 + $0xc0] sm:$0xff] %vm668_vm1, %v981_v43 }
  0xe9   :  { %v983_v18 = vpop.eup %982 }
  0xea   :  { %v985_v9 = vpop.eup %984  ;;  %696 = vst.msk [vmem:[%s1882_s4 + $0xd8] sm:$0xff] %vm668_vm1, %v983_v18 }
  0xeb   :  { %695 = vst.msk [vmem:[%s1882_s4 + $0xd0] sm:$0xff] %vm668_vm1, %v985_v9 }
  0xed   :  { %v987_v28 = vpop.eup %986 }
  0xee   :  { %v989_v42 = vpop.eup %988  ;;  %698 = vst.msk [vmem:[%s1882_s4 + $0xe8] sm:$0xff] %vm668_vm1, %v987_v28 }
  0xef   :  { %697 = vst.msk [vmem:[%s1882_s4 + $0xe0] sm:$0xff] %vm668_vm1, %v989_v42 }
  0xf1   :  { %v991_v34 = vpop.eup %990 }
  0xf2   :  { %v993_v59 = vpop.eup %992  ;;  %700 = vst.msk [vmem:[%s1882_s4 + $0xf8] sm:$0xff] %vm668_vm1, %v991_v34 }
  0xf3   :  { %699 = vst.msk [vmem:[%s1882_s4 + $0xf0] sm:$0xff] %vm668_vm1, %v993_v59 }

</bundles_post_ra>
